<compile_context>
chip_gen: v6e
topology: v6e:2x2x1
jax: 0.10.0
libtpu: 0.0.40
codegen_flags: <defaults>
</compile_context>

<pallas_src>
import functools

import jax
import jax.numpy as jnp
from jax.experimental import pallas as pl
from jax.experimental.pallas import tpu as pltpu


def _dqn_kernel(x_ref, w1_ref, b1_ref, w2_ref, b2_ref, out_ref):
    # x.float() from the PyTorch forward.
    x = x_ref[...].astype(jnp.float32)
    obs = x.shape[1]

    if obs <= 8:
        # K is tiny: 4 broadcast multiply-adds on the (otherwise idle) VPU
        # instead of an MXU matmul padded from K=obs up to 128/256.
        acc = x[:, 0:1] * w1_ref[0:1, :]
        for k in range(1, obs):
            acc = acc + x[:, k:k + 1] * w1_ref[k:k + 1, :]
        h = acc + b1_ref[...]
    else:
        h = jnp.dot(x, w1_ref[...], preferred_element_type=jnp.float32) + b1_ref[...]

    h = jnp.maximum(h, 0.0)

    # Linear(hidden, n_actions_padded) on the MXU; lane-dense (x, 128) store.
    out = jnp.dot(h, w2_ref[...], preferred_element_type=jnp.float32) + b2_ref[...]
    out_ref[...] = out.astype(out_ref.dtype)


def _round_up(x, m):
    return ((x + m - 1) // m) * m


@functools.partial(jax.jit, static_argnames=("tile_b",))
def dqn_forward(x, w1, b1, w2, b2, *, tile_b=512):
    """Pallas-backed forward of DQN.net(x.float()).

    x:  (B, obs_size)           any real dtype (cast to f32 inside the kernel)
    w1: (obs_size, hidden)      f32
    b1: (1, hidden)             f32
    w2: (hidden, n_actions)     f32
    b2: (1, n_actions)          f32
    returns: (B, n_actions)     f32
    """
    B, obs = x.shape
    hidden = w1.shape[1]
    n_actions = w2.shape[1]

    # ---- lane-dense output padding (multiple of 128 lanes) -----------------
    n_out_pad = max(128, _round_up(n_actions, 128))
    if n_out_pad != n_actions:
        w2p = jnp.zeros((hidden, n_out_pad), jnp.float32).at[:, :n_actions].set(w2)
        b2p = jnp.zeros((1, n_out_pad), jnp.float32).at[:, :n_actions].set(b2)
    else:
        w2p, b2p = w2.astype(jnp.float32), b2.astype(jnp.float32)

    # ---- batch tiling: multiple of 8 sublanes, padded to a whole grid ------
    tb = min(tile_b, _round_up(B, 8))
    tb = _round_up(tb, 8)
    b_pad = _round_up(B, tb)
    if b_pad != B:
        x_p = jnp.zeros((b_pad, obs), x.dtype).at[:B].set(x)
    else:
        x_p = x
    grid = (b_pad // tb,)

    cost = pl.CostEstimate(
        flops=2 * b_pad * (obs * hidden + hidden * n_out_pad),
        transcendentals=0,
        bytes_accessed=(x_p.size * x_p.dtype.itemsize
                        + (w1.size + b1.size + w2p.size + b2p.size) * 4
                        + b_pad * n_out_pad * 4),
    )

    out = pl.pallas_call(
        _dqn_kernel,
        out_shape=jax.ShapeDtypeStruct((b_pad, n_out_pad), jnp.float32),
        grid=grid,
        in_specs=[
            # x streams through one batch tile per grid step.
            pl.BlockSpec((tb, obs), lambda i: (i, 0)),
            # Weights/biases: constant block index -> fetched once, VMEM-resident.
            pl.BlockSpec((obs, hidden), lambda i: (0, 0)),
            pl.BlockSpec((1, hidden), lambda i: (0, 0)),
            pl.BlockSpec((hidden, n_out_pad), lambda i: (0, 0)),
            pl.BlockSpec((1, n_out_pad), lambda i: (0, 0)),
        ],
        out_specs=pl.BlockSpec((tb, n_out_pad), lambda i: (i, 0)),
        compiler_params=pltpu.CompilerParams(
            dimension_semantics=("parallel",),
        ),
        cost_estimate=cost,
    )(x_p, w1.astype(jnp.float32), b1.astype(jnp.float32), w2p, b2p)

    return out[:B, :n_actions]


def init_dqn_params(key, obs_size, n_actions, hidden_size=128):
    """Deterministic init mimicking PyTorch nn.Linear default (uniform +/- 1/sqrt(fan_in))."""
    k1, k2, k3, k4 = jax.random.split(key, 4)
    bound1 = 1.0 / jnp.sqrt(obs_size)
    bound2 = 1.0 / jnp.sqrt(hidden_size)
    w1 = jax.random.uniform(k1, (obs_size, hidden_size), jnp.float32, -bound1, bound1)
    b1 = jax.random.uniform(k2, (1, hidden_size), jnp.float32, -bound1, bound1)
    w2 = jax.random.uniform(k3, (hidden_size, n_actions), jnp.float32, -bound2, bound2)
    b2 = jax.random.uniform(k4, (1, n_actions), jnp.float32, -bound2, bound2)
    return w1, b1, w2, b2


def _reference(x, w1, b1, w2, b2):
    return jnp.maximum(x.astype(jnp.float32) @ w1 + b1, 0.0) @ w2 + b2


if __name__ == "__main__":
    key = jax.random.PRNGKey(0)
    kx, kp, kx2 = jax.random.split(key, 3)

    # CartPole-like shapes: obs_size=4, n_actions=2, hidden=128.
    obs_size, n_actions, hidden_size = 4, 2, 128
    w1, b1, w2, b2 = init_dqn_params(kp, obs_size, n_actions, hidden_size)

    # 1) Small online-action-selection batch.
    x = jax.random.normal(kx, (8, obs_size), dtype=jnp.float32)
    out = dqn_forward(x, w1, b1, w2, b2)
    jax.block_until_ready(out)
    ref = _reference(x, w1, b1, w2, b2)
    assert out.shape == (8, n_actions)
    assert jnp.allclose(out, ref, atol=1e-5, rtol=1e-5)

    # 2) Replay-batch style call exercising the batch grid + padding path.
    x2 = jax.random.normal(kx2, (300, obs_size), dtype=jnp.float32)
    out2 = dqn_forward(x2, w1, b1, w2, b2, tile_b=128)
    jax.block_until_ready(out2)
    ref2 = _reference(x2, w1, b1, w2, b2)
    assert out2.shape == (300, n_actions)
    assert jnp.allclose(out2, ref2, atol=1e-5, rtol=1e-5)

    print("KERNEL_OK")
</pallas_src>

<mosaic_0001>
module attributes {stable_mosaic.version = 11 : i64} {
  func.func @_dqn_kernel(%arg0: i32, %arg1: memref<8x4xf32, #tpu.memory_space<vmem>>, %arg2: memref<4x128xf32, #tpu.memory_space<vmem>>, %arg3: memref<1x128xf32, #tpu.memory_space<vmem>>, %arg4: memref<128x128xf32, #tpu.memory_space<vmem>>, %arg5: memref<1x128xf32, #tpu.memory_space<vmem>>, %arg6: memref<8x128xf32, #tpu.memory_space<vmem>>) attributes {dimension_semantics = [#tpu.dimension_semantics<parallel>], iteration_bounds = array<i64: 1>, scalar_prefetch = 0 : i64, scratch_operands = 0 : i64, tpu.core_type = #tpu.core_type<tc>, window_params = [{transform_indices = @transform_0, window_bounds = array<i64: 8, 4>}, {pipeline_mode = #tpu.pipeline_mode<synchronous>, transform_indices = @transform_1, window_bounds = array<i64: 4, 128>}, {pipeline_mode = #tpu.pipeline_mode<synchronous>, transform_indices = @transform_2, window_bounds = array<i64: 1, 128>}, {pipeline_mode = #tpu.pipeline_mode<synchronous>, transform_indices = @transform_3, window_bounds = array<i64: 128, 128>}, {pipeline_mode = #tpu.pipeline_mode<synchronous>, transform_indices = @transform_4, window_bounds = array<i64: 1, 128>}, {transform_indices = @transform_5, window_bounds = array<i64: 8, 128>}]} {
    %c0 = arith.constant 0 : index
    %c0_0 = arith.constant 0 : index
    %0 = vector.load %arg1[%c0, %c0_0] : memref<8x4xf32, #tpu.memory_space<vmem>>, vector<8x4xf32>
    %1 = vector.extract_strided_slice %0 {offsets = [0, 0], sizes = [8, 1], strides = [1, 1]} : vector<8x4xf32> to vector<8x1xf32>
    %c0_1 = arith.constant 0 : index
    %c0_2 = arith.constant 0 : index
    %2 = vector.load %arg2[%c0_1, %c0_2] : memref<4x128xf32, #tpu.memory_space<vmem>>, vector<1x128xf32>
    %3 = vector.broadcast %1 : vector<8x1xf32> to vector<8x128xf32>
    %4 = vector.broadcast %2 : vector<1x128xf32> to vector<8x128xf32>
    %5 = arith.mulf %3, %4 : vector<8x128xf32>
    %6 = vector.extract_strided_slice %0 {offsets = [0, 1], sizes = [8, 1], strides = [1, 1]} : vector<8x4xf32> to vector<8x1xf32>
    %c1 = arith.constant 1 : index
    %c0_3 = arith.constant 0 : index
    %7 = vector.load %arg2[%c1, %c0_3] : memref<4x128xf32, #tpu.memory_space<vmem>>, vector<1x128xf32>
    %8 = vector.broadcast %6 : vector<8x1xf32> to vector<8x128xf32>
    %9 = vector.broadcast %7 : vector<1x128xf32> to vector<8x128xf32>
    %10 = arith.mulf %8, %9 : vector<8x128xf32>
    %11 = arith.addf %5, %10 : vector<8x128xf32>
    %12 = vector.extract_strided_slice %0 {offsets = [0, 2], sizes = [8, 1], strides = [1, 1]} : vector<8x4xf32> to vector<8x1xf32>
    %c2 = arith.constant 2 : index
    %c0_4 = arith.constant 0 : index
    %13 = vector.load %arg2[%c2, %c0_4] : memref<4x128xf32, #tpu.memory_space<vmem>>, vector<1x128xf32>
    %14 = vector.broadcast %12 : vector<8x1xf32> to vector<8x128xf32>
    %15 = vector.broadcast %13 : vector<1x128xf32> to vector<8x128xf32>
    %16 = arith.mulf %14, %15 : vector<8x128xf32>
    %17 = arith.addf %11, %16 : vector<8x128xf32>
    %18 = vector.extract_strided_slice %0 {offsets = [0, 3], sizes = [8, 1], strides = [1, 1]} : vector<8x4xf32> to vector<8x1xf32>
    %c3 = arith.constant 3 : index
    %c0_5 = arith.constant 0 : index
    %19 = vector.load %arg2[%c3, %c0_5] : memref<4x128xf32, #tpu.memory_space<vmem>>, vector<1x128xf32>
    %20 = vector.broadcast %18 : vector<8x1xf32> to vector<8x128xf32>
    %21 = vector.broadcast %19 : vector<1x128xf32> to vector<8x128xf32>
    %22 = arith.mulf %20, %21 : vector<8x128xf32>
    %23 = arith.addf %17, %22 : vector<8x128xf32>
    %c0_6 = arith.constant 0 : index
    %c0_7 = arith.constant 0 : index
    %24 = vector.load %arg3[%c0_6, %c0_7] : memref<1x128xf32, #tpu.memory_space<vmem>>, vector<1x128xf32>
    %25 = vector.broadcast %24 : vector<1x128xf32> to vector<8x128xf32>
    %26 = arith.addf %23, %25 : vector<8x128xf32>
    %cst = arith.constant 0.000000e+00 : f32
    %27 = vector.broadcast %cst : f32 to vector<8x128xf32>
    %28 = arith.maximumf %26, %27 : vector<8x128xf32>
    %c0_8 = arith.constant 0 : index
    %c0_9 = arith.constant 0 : index
    %29 = vector.load %arg4[%c0_8, %c0_9] : memref<128x128xf32, #tpu.memory_space<vmem>>, vector<128x128xf32>
    %cst_10 = arith.constant dense<0.000000e+00> : vector<8x128xf32>
    %30 = tpu.matmul %28, %29, %cst_10 {dimension_numbers = #tpu.dot_dimension_numbers<[1], [0], [0], [1], [0, 0, 1, 1], [], []>} : vector<8x128xf32>, vector<128x128xf32>, vector<8x128xf32> -> vector<8x128xf32>
    %c0_11 = arith.constant 0 : index
    %c0_12 = arith.constant 0 : index
    %31 = vector.load %arg5[%c0_11, %c0_12] : memref<1x128xf32, #tpu.memory_space<vmem>>, vector<1x128xf32>
    %32 = vector.broadcast %31 : vector<1x128xf32> to vector<8x128xf32>
    %33 = arith.addf %30, %32 : vector<8x128xf32>
    %c0_13 = arith.constant 0 : index
    %c0_14 = arith.constant 0 : index
    %34 = vector.load %arg6[%c0_13, %c0_14] : memref<8x128xf32, #tpu.memory_space<vmem>>, vector<8x128xf32>
    tpu.vector_store %arg6[%c0_13, %c0_14], %33 {strides = array<i32>} : memref<8x128xf32, #tpu.memory_space<vmem>>, vector<8x128xf32>,
    return
  }
  func.func @transform_0(%arg0: i32) -> (i32, i32) {
    %c0_i32 = arith.constant 0 : i32
    %c0_i32_0 = arith.constant 0 : i32
    return %arg0, %c0_i32 : i32, i32
  }
  func.func @transform_1(%arg0: i32) -> (i32, i32) {
    %c0_i32 = arith.constant 0 : i32
    %c0_i32_0 = arith.constant 0 : i32
    %c0_i32_1 = arith.constant 0 : i32
    return %c0_i32, %c0_i32_0 : i32, i32
  }
  func.func @transform_2(%arg0: i32) -> (i32, i32) {
    %c0_i32 = arith.constant 0 : i32
    %c0_i32_0 = arith.constant 0 : i32
    %c0_i32_1 = arith.constant 0 : i32
    return %c0_i32, %c0_i32_0 : i32, i32
  }
  func.func @transform_3(%arg0: i32) -> (i32, i32) {
    %c0_i32 = arith.constant 0 : i32
    %c0_i32_0 = arith.constant 0 : i32
    %c0_i32_1 = arith.constant 0 : i32
    return %c0_i32, %c0_i32_0 : i32, i32
  }
  func.func @transform_4(%arg0: i32) -> (i32, i32) {
    %c0_i32 = arith.constant 0 : i32
    %c0_i32_0 = arith.constant 0 : i32
    %c0_i32_1 = arith.constant 0 : i32
    return %c0_i32, %c0_i32_0 : i32, i32
  }
  func.func @transform_5(%arg0: i32) -> (i32, i32) {
    %c0_i32 = arith.constant 0 : i32
    %c0_i32_0 = arith.constant 0 : i32
    return %arg0, %c0_i32 : i32, i32
  }
}

</mosaic_0001>

<bundles_post_ra>
// kernel: dqn_forward.1
= control target key start
LH: loop header
LB: loop body
LE: loop exit
PB: predicated region body
PF: predicated region fallthrough
CT: control target
= control target key end

     0   :  { %v241_v0 = vmov 0   ;;  %v242_v2 = vmov 2   ;;  %v243_v4 = vmov 0.0   ;;  %v244_v6 = vmov 1   ;;  %s349_s0 = inlined_call_operand.vmem [shape: f32[8,4], index: 0, kind: input, shape index: {}]   ;;  %s350_s3 = inlined_call_operand.vmem [shape: f32[128,128], index: 3, kind: input, shape index: {}]   ;;  %s351_s1 = inlined_call_operand.vmem [shape: f32[4,128], index: 1, kind: input, shape index: {}]   ;;  %s352_s2 = inlined_call_operand.vmem [shape: f32[1,128], index: 2, kind: input, shape index: {}]   ;;  %s353_s4 = inlined_call_operand.vmem [shape: f32[1,128], index: 4, kind: input, shape index: {}]   ;;  %s354_s5 = inlined_call_operand.vmem [shape: f32[8,128], index: 5, kind: output, shape index: {}]  }
   0x1   :  { %236 = vset.pattern.permute.xlu0 %v241_v0  ;;  %v20_v1 = vld [vmem:[%s349_s0] sm:$0xff]  ;;  %238 = vset.pattern.permute.xlu1 %v242_v2  ;;  %v89_v3 = vld [vmem:[%s350_s3 + $0x78] sm:$0xff]  ;;  %v88_v5 = vld [vmem:[%s350_s3 + $0x70] sm:$0xff]  ;;  %v245_v7 = vmov 3   ;;  %vm246_vm0 = vmmov 0  }
   0x2   :  { %24 = vperm.xlu0 %236, %v20_v1   ;;  %45 = vperm.xlu1 %238, %v20_v1   ;;  %v87_v8 = vld [vmem:[%s350_s3 + $0x68] sm:$0xff]  ;;  %v86_v9 = vld [vmem:[%s350_s3 + $0x60] sm:$0xff]  ;;  %v85_v10 = vld [vmem:[%s350_s3 + $0x58] sm:$0xff] }
   0x3   :  { %195 = vmatprep.subr.mxu0 %v243_v4  ;;  %227 = vmatprep.mubr.msk.f32.mxu0 %vm246_vm0, %v243_v4  ;;  %v84_v11 = vld [vmem:[%s350_s3 + $0x50] sm:$0xff]  ;;  %v83_v12 = vld [vmem:[%s350_s3 + $0x48] sm:$0xff]  ;;  %v82_v13 = vld [vmem:[%s350_s3 + $0x40] sm:$0xff] }
   0x4   :  { %196 = vmatpush3.msra.mxu0 %v89_v3  ;;  %v81_v14 = vld [vmem:[%s350_s3 + $0x38] sm:$0xff]  ;;  %v80_v15 = vld [vmem:[%s350_s3 + $0x30] sm:$0xff]  ;;  %v79_v16 = vld [vmem:[%s350_s3 + $0x28] sm:$0xff] }
   0x5   :  { %197 = vmatprep.subr.mxu0 %v243_v4  ;;  %v78_v17 = vld [vmem:[%s350_s3 + $0x20] sm:$0xff]  ;;  %v77_v18 = vld [vmem:[%s350_s3 + $0x18] sm:$0xff]  ;;  %v76_v19 = vld [vmem:[%s350_s3 + $0x10] sm:$0xff] }
   0x6   :  { %237 = vset.pattern.permute.xlu0 %v244_v6  ;;  %239 = vset.pattern.permute.xlu1 %v245_v7  ;;  %v75_v20 = vld [vmem:[%s350_s3 + $0x8] sm:$0xff]  ;;  %v74_v21 = vld [vmem:[%s350_s3] sm:$0xff] }
   0x7   :  { %34 = vperm.xlu0 %237, %v20_v1   ;;  %56 = vperm.xlu1 %239, %v20_v1   ;;  %v172_v24 = vld [vmem:[%s351_s1] ss:$0 sm:$0xff]  ;;  %v173_v25 = vld [vmem:[%s351_s1 + $0x1] ss:$0 sm:$0xff]  ;;  %v174_v26 = vld [vmem:[%s351_s1 + $0x2] ss:$0 sm:$0xff] }
   0x8   :  { %198 = vmatpush3.msra.mxu0 %v88_v5  ;;  %v175_v28 = vld [vmem:[%s351_s1 + $0x3] ss:$0 sm:$0xff]  ;;  %v176_v36 = vld [vmem:[%s352_s2] ss:$0 sm:$0xff] }
   0x9   :  { %199 = vmatprep.subr.mxu0 %v243_v4  ;;  %v177_v40 = vld [vmem:[%s353_s4] ss:$0 sm:$0xff] }
   0xa   :  { %200 = vmatpush3.msra.mxu0 %v87_v8 }
   0xb   :  { %201 = vmatprep.subr.mxu0 %v243_v4  ;;  %240 = vset.pattern.permute.xlu0 %v245_v7 }
   0xc   :  { %202 = vmatpush3.msra.mxu0 %v86_v9 }
   0xd   :  { %203 = vmatprep.subr.mxu0 %v243_v4 }
   0xe   :  { %204 = vmatpush3.msra.mxu0 %v85_v10 }
   0xf   :  { %205 = vmatprep.subr.mxu0 %v243_v4 }
  0x10   :  { %206 = vmatpush3.msra.mxu0 %v84_v11 }
  0x11   :  { %207 = vmatprep.subr.mxu0 %v243_v4 }
  0x12   :  { %208 = vmatpush3.msra.mxu0 %v83_v12 }
  0x13   :  { %209 = vmatprep.subr.mxu0 %v243_v4 }
  0x14   :  { %210 = vmatpush3.msra.mxu0 %v82_v13 }
  0x15   :  { %211 = vmatprep.subr.mxu0 %v243_v4 }
  0x16   :  { %212 = vmatpush3.msra.mxu0 %v81_v14 }
  0x17   :  { %213 = vmatprep.subr.mxu0 %v243_v4 }
  0x18   :  { %214 = vmatpush3.msra.mxu0 %v80_v15 }
  0x19   :  { %215 = vmatprep.subr.mxu0 %v243_v4 }
  0x1a   :  { %216 = vmatpush3.msra.mxu0 %v79_v16 }
  0x1b   :  { %217 = vmatprep.subr.mxu0 %v243_v4 }
  0x1c   :  { %218 = vmatpush3.msra.mxu0 %v78_v17 }
  0x1d   :  { %219 = vmatprep.subr.mxu0 %v243_v4 }
  0x1e   :  { %220 = vmatpush3.msra.mxu0 %v77_v18 }
  0x1f   :  { %221 = vmatprep.subr.mxu0 %v243_v4 }
  0x20   :  { %222 = vmatpush3.msra.mxu0 %v76_v19 }
  0x21   :  { %223 = vmatprep.subr.mxu0 %v243_v4 }
  0x22   :  { %224 = vmatpush3.msra.mxu0 %v75_v20 }
  0x23   :  { %225 = vmatprep.subr.mxu0 %v243_v4 }
  0x24   :  { %226 = vmatpush3.msra.mxu0 %v74_v21 }
  0x7d   :  { %v25_v22 = vpop.permute.xlu0 %24  ;;  %v46_v23 = vpop.permute.xlu1 %45 }
  0x7e   :  { %v31_v30 = vmul.f32 %v172_v24, %v25_v22  ;;  %v52_v32 = vmul.f32 %v174_v26, %v46_v23 }
  0x82   :  { %v35_v27 = vpop.permute.xlu0 %34  ;;  %v57_v29 = vpop.permute.xlu1 %56 }
  0x83   :  { %v41_v31 = vmul.f32 %v173_v25, %v35_v27  ;;  %v63_v34 = vmul.f32 %v175_v28, %v57_v29 }
  0x85   :  { %v42_v33 = vadd.f32 %v41_v31, %v31_v30 }
  0x87   :  { %v53_v35 = vadd.f32 %v52_v32, %v42_v33 }
  0x89   :  { %v64_v37 = vadd.f32 %v63_v34, %v53_v35 }
  0x8b   :  { %v72_v38 = vadd.f32 %v176_v36, %v64_v37 }
  0x8d   :  { %v73_v39 = vmax.f32 %v72_v38, 0.0 }
  0x8f   :  { %228 = vmatmul.mubr.f32.vlgmr.msra.gmra.mxu0 %v73_v39 }
 0x14f   :  { %v163_v41 = vpop.f32.mrf.mxu0 }
 0x150   :  { %v164_v42 = vadd.f32 %v177_v40, %v163_v41 }
 0x151   :  { %v229_v43 = vpop.f32.mrf.mxu0 }
 0x152   :  { %167 = vst [vmem:[%s354_s5] sm:$0xff] %v164_v42 }

</bundles_post_ra>
